<compile_context>
chip_gen: v7x
topology: tpu7x:2x2x1
jax: 0.10.0
libtpu: 0.0.40
codegen_flags: <defaults>
</compile_context>

<pallas_src>
import functools

import jax
import jax.numpy as jnp
from jax.experimental import pallas as pl
from jax.experimental.pallas import tpu as pltpu


def _round_up(x, m):
    return ((x + m - 1) // m) * m


def _noisy_linear_kernel(x_ref, wmu_ref, wsig_ref, ein_ref, eout_ref,
                         bmu_ref, bsig_ref, o_ref, *, mxu_dtype):
    # Factorized noise, composed on the VPU (free under a DMA-bound kernel):
    #   weight.T[k, n] = wmu.T[k, n] + wsig.T[k, n] * eps_in[k] * eps_out[n]
    w = wmu_ref[...] + wsig_ref[...] * (ein_ref[...] * eout_ref[...])   # (K, tn)
    b = bmu_ref[...] + bsig_ref[...] * eout_ref[...]                    # (1, tn)
    # Weight tile is already K-major -> MXU consumes it directly (no w.T).
    y = jnp.dot(x_ref[...].astype(mxu_dtype), w.astype(mxu_dtype),
                preferred_element_type=jnp.float32)                     # (tm, tn)
    o_ref[...] = (y + b).astype(o_ref.dtype)


def _choose_tiles(b_pad, n_pad, k_pad):
    """Tile sizes that keep double-buffered VMEM use safe on v5e/v6e/v7x."""
    # Batch tile: full (already a multiple of 8) up to 256 rows.
    if b_pad <= 256:
        bm = b_pad
    else:
        bm = 256
    # Out tile: prefer 512/256 (256 matches the v6e/v7x MXU width) when the
    # double-buffered weight streams (mu + sigma, 2 buffers) stay under ~12 MiB.
    weight_budget = 12 * 1024 * 1024
    bn = 128
    for cand in (512, 256):
        if n_pad % cand == 0 and 2 * 2 * k_pad * cand * 4 <= weight_budget:
            bn = cand
            break
    return bm, bn


def noisy_linear_forward(x, weight_mu, weight_sigma, bias_mu, bias_sigma,
                         eps_in, eps_out, *, mxu_dtype=jnp.float32):
    """Pallas TPU implementation of NoisyLinear.forward.

    x:                       (batch, in_features) float32
    weight_mu, weight_sigma: (out_features, in_features) float32
    bias_mu, bias_sigma:     (out_features,) float32
    eps_in:                  (in_features,)  factorized-noise input vector
    eps_out:                 (out_features,) factorized-noise output vector
                             (weight_epsilon = outer(eps_out, eps_in),
                              bias_epsilon   = eps_out — exactly as the module's
                              reset_noise() constructs its buffers)
    returns:                 (batch, out_features) float32
    """
    batch, in_features = x.shape
    out_features = weight_mu.shape[0]

    # Pad to MXU/lane-friendly shapes (zero padding is exact for a matmul).
    k_pad = _round_up(in_features, 128)
    n_pad = _round_up(out_features, 128)
    b_pad = _round_up(batch, 8)
    bm, bn = _choose_tiles(b_pad, n_pad, k_pad)
    b_pad = _round_up(b_pad, bm)

    dk, dn, db = k_pad - in_features, n_pad - out_features, b_pad - batch

    x_p = jnp.pad(x, ((0, db), (0, dk)))
    # K-major (in, out) weight layout: one-time wrapper plumbing, removes the
    # in-kernel transpose entirely.
    wmu_t = jnp.pad(weight_mu.T, ((0, dk), (0, dn)))
    wsig_t = jnp.pad(weight_sigma.T, ((0, dk), (0, dn)))
    ein = jnp.pad(eps_in.reshape(in_features, 1), ((0, dk), (0, 0)))
    eout = jnp.pad(eps_out.reshape(1, out_features), ((0, 0), (0, dn)))
    bmu = jnp.pad(bias_mu.reshape(1, out_features), ((0, 0), (0, dn)))
    bsig = jnp.pad(bias_sigma.reshape(1, out_features), ((0, 0), (0, dn)))

    grid = (b_pad // bm, n_pad // bn)
    in_specs = [
        pl.BlockSpec((bm, k_pad), lambda i, j: (i, 0)),    # x (full K per block)
        pl.BlockSpec((k_pad, bn), lambda i, j: (0, j)),    # weight_mu.T
        pl.BlockSpec((k_pad, bn), lambda i, j: (0, j)),    # weight_sigma.T
        pl.BlockSpec((k_pad, 1), lambda i, j: (0, 0)),     # eps_in  (column)
        pl.BlockSpec((1, bn), lambda i, j: (0, j)),        # eps_out (row; also bias_epsilon)
        pl.BlockSpec((1, bn), lambda i, j: (0, j)),        # bias_mu
        pl.BlockSpec((1, bn), lambda i, j: (0, j)),        # bias_sigma
    ]
    out_specs = pl.BlockSpec((bm, bn), lambda i, j: (i, j))

    flops = 2 * batch * in_features * out_features
    bytes_accessed = 4 * (batch * in_features
                          + 2 * in_features * out_features
                          + in_features + 3 * out_features
                          + batch * out_features)

    out_padded = pl.pallas_call(
        functools.partial(_noisy_linear_kernel, mxu_dtype=mxu_dtype),
        out_shape=jax.ShapeDtypeStruct((b_pad, n_pad), x.dtype),
        grid=grid,
        in_specs=in_specs,
        out_specs=out_specs,
        compiler_params=pltpu.CompilerParams(
            dimension_semantics=("parallel", "parallel"),
            vmem_limit_bytes=32 * 1024 * 1024,
        ),
        cost_estimate=pl.CostEstimate(
            flops=flops, transcendentals=0, bytes_accessed=bytes_accessed),
    )(x_p, wmu_t, wsig_t, ein, eout, bmu, bsig)

    return out_padded[:batch, :out_features]


def init_noisy_linear_params(key, in_features, out_features, std_init=0.5):
    """Deterministic init mirroring NoisyLinear.reset_parameters / reset_noise.

    The module stores weight_epsilon = outer(eps_out, eps_in) and
    bias_epsilon = eps_out; we keep the factors (that is all the kernel needs).
    """
    k_wmu, k_bmu, k_ein, k_eout = jax.random.split(key, 4)
    mu_range = 1.0 / jnp.sqrt(jnp.float32(in_features))

    weight_mu = jax.random.uniform(
        k_wmu, (out_features, in_features), jnp.float32, -mu_range, mu_range)
    weight_sigma = jnp.full((out_features, in_features),
                            std_init / jnp.sqrt(jnp.float32(in_features)),
                            jnp.float32)
    bias_mu = jax.random.uniform(
        k_bmu, (out_features,), jnp.float32, -mu_range, mu_range)
    bias_sigma = jnp.full((out_features,),
                          std_init / jnp.sqrt(jnp.float32(out_features)),
                          jnp.float32)

    eps_in = jax.random.normal(k_ein, (in_features,), jnp.float32)
    eps_out = jax.random.normal(k_eout, (out_features,), jnp.float32)

    return dict(weight_mu=weight_mu, weight_sigma=weight_sigma,
                bias_mu=bias_mu, bias_sigma=bias_sigma,
                eps_in=eps_in, eps_out=eps_out)


if __name__ == "__main__":
    key = jax.random.PRNGKey(0)
    k_params, k_x = jax.random.split(key)

    batch, in_features, out_features = 8, 32, 64
    params = init_noisy_linear_params(k_params, in_features, out_features)
    x = jax.random.normal(k_x, (batch, in_features), jnp.float32)

    y = noisy_linear_forward(x, params["weight_mu"], params["weight_sigma"],
                             params["bias_mu"], params["bias_sigma"],
                             params["eps_in"], params["eps_out"])
    y = jax.block_until_ready(y)

    # Pure-JAX reference check (reconstructs the module's buffers explicitly).
    weight_epsilon = jnp.outer(params["eps_out"], params["eps_in"])
    w_ref = params["weight_mu"] + params["weight_sigma"] * weight_epsilon
    b_ref = params["bias_mu"] + params["bias_sigma"] * params["eps_out"]
    y_ref = x @ w_ref.T + b_ref

    assert y.shape == (batch, out_features)
    assert jnp.allclose(y, y_ref, atol=1e-4, rtol=1e-4), \
        float(jnp.max(jnp.abs(y - y_ref)))

    print("KERNEL_OK")
</pallas_src>

<mosaic_0001>
module attributes {stable_mosaic.version = 11 : i64} {
  func.func @_noisy_linear_kernel(%arg0: i32, %arg1: i32, %arg2: memref<8x128xf32, #tpu.memory_space<vmem>>, %arg3: memref<128x128xf32, #tpu.memory_space<vmem>>, %arg4: memref<128x128xf32, #tpu.memory_space<vmem>>, %arg5: memref<128x1xf32, #tpu.memory_space<vmem>>, %arg6: memref<1x128xf32, #tpu.memory_space<vmem>>, %arg7: memref<1x128xf32, #tpu.memory_space<vmem>>, %arg8: memref<1x128xf32, #tpu.memory_space<vmem>>, %arg9: memref<8x128xf32, #tpu.memory_space<vmem>>) attributes {dimension_semantics = [#tpu.dimension_semantics<parallel>, #tpu.dimension_semantics<parallel>], iteration_bounds = array<i64: 1, 1>, scalar_prefetch = 0 : i64, scratch_operands = 0 : i64, tpu.core_type = #tpu.core_type<tc>, window_params = [{transform_indices = @transform_0, window_bounds = array<i64: 8, 128>}, {transform_indices = @transform_1, window_bounds = array<i64: 128, 128>}, {transform_indices = @transform_2, window_bounds = array<i64: 128, 128>}, {pipeline_mode = #tpu.pipeline_mode<synchronous>, transform_indices = @transform_3, window_bounds = array<i64: 128, 1>}, {transform_indices = @transform_4, window_bounds = array<i64: 1, 128>}, {transform_indices = @transform_5, window_bounds = array<i64: 1, 128>}, {transform_indices = @transform_6, window_bounds = array<i64: 1, 128>}, {transform_indices = @transform_7, window_bounds = array<i64: 8, 128>}]} {
    %c0 = arith.constant 0 : index
    %c0_0 = arith.constant 0 : index
    %0 = vector.load %arg3[%c0, %c0_0] : memref<128x128xf32, #tpu.memory_space<vmem>>, vector<128x128xf32>
    %c0_1 = arith.constant 0 : index
    %c0_2 = arith.constant 0 : index
    %1 = vector.load %arg4[%c0_1, %c0_2] : memref<128x128xf32, #tpu.memory_space<vmem>>, vector<128x128xf32>
    %c0_3 = arith.constant 0 : index
    %c0_4 = arith.constant 0 : index
    %2 = vector.load %arg5[%c0_3, %c0_4] : memref<128x1xf32, #tpu.memory_space<vmem>>, vector<128x1xf32>
    %c0_5 = arith.constant 0 : index
    %c0_6 = arith.constant 0 : index
    %3 = vector.load %arg6[%c0_5, %c0_6] : memref<1x128xf32, #tpu.memory_space<vmem>>, vector<1x128xf32>
    %4 = vector.broadcast %2 : vector<128x1xf32> to vector<128x128xf32>
    %5 = vector.broadcast %3 : vector<1x128xf32> to vector<128x128xf32>
    %6 = arith.mulf %4, %5 : vector<128x128xf32>
    %7 = arith.mulf %1, %6 : vector<128x128xf32>
    %8 = arith.addf %0, %7 : vector<128x128xf32>
    %c0_7 = arith.constant 0 : index
    %c0_8 = arith.constant 0 : index
    %9 = vector.load %arg7[%c0_7, %c0_8] : memref<1x128xf32, #tpu.memory_space<vmem>>, vector<1x128xf32>
    %c0_9 = arith.constant 0 : index
    %c0_10 = arith.constant 0 : index
    %10 = vector.load %arg8[%c0_9, %c0_10] : memref<1x128xf32, #tpu.memory_space<vmem>>, vector<1x128xf32>
    %c0_11 = arith.constant 0 : index
    %c0_12 = arith.constant 0 : index
    %11 = vector.load %arg6[%c0_11, %c0_12] : memref<1x128xf32, #tpu.memory_space<vmem>>, vector<1x128xf32>
    %12 = arith.mulf %10, %11 : vector<1x128xf32>
    %13 = arith.addf %9, %12 : vector<1x128xf32>
    %c0_13 = arith.constant 0 : index
    %c0_14 = arith.constant 0 : index
    %14 = vector.load %arg2[%c0_13, %c0_14] : memref<8x128xf32, #tpu.memory_space<vmem>>, vector<8x128xf32>
    %cst = arith.constant dense<0.000000e+00> : vector<8x128xf32>
    %15 = tpu.matmul %14, %8, %cst {dimension_numbers = #tpu.dot_dimension_numbers<[1], [0], [0], [1], [0, 0, 1, 1], [], []>} : vector<8x128xf32>, vector<128x128xf32>, vector<8x128xf32> -> vector<8x128xf32>
    %16 = vector.broadcast %13 : vector<1x128xf32> to vector<8x128xf32>
    %17 = arith.addf %15, %16 : vector<8x128xf32>
    %c0_15 = arith.constant 0 : index
    %c0_16 = arith.constant 0 : index
    %18 = vector.load %arg9[%c0_15, %c0_16] : memref<8x128xf32, #tpu.memory_space<vmem>>, vector<8x128xf32>
    tpu.vector_store %arg9[%c0_15, %c0_16], %17 {strides = array<i32>} : memref<8x128xf32, #tpu.memory_space<vmem>>, vector<8x128xf32>,
    return
  }
  func.func @transform_0(%arg0: i32, %arg1: i32) -> (i32, i32) {
    %c0_i32 = arith.constant 0 : i32
    %c0_i32_0 = arith.constant 0 : i32
    return %arg0, %c0_i32 : i32, i32
  }
  func.func @transform_1(%arg0: i32, %arg1: i32) -> (i32, i32) {
    %c0_i32 = arith.constant 0 : i32
    %c0_i32_0 = arith.constant 0 : i32
    return %c0_i32, %arg1 : i32, i32
  }
  func.func @transform_2(%arg0: i32, %arg1: i32) -> (i32, i32) {
    %c0_i32 = arith.constant 0 : i32
    %c0_i32_0 = arith.constant 0 : i32
    return %c0_i32, %arg1 : i32, i32
  }
  func.func @transform_3(%arg0: i32, %arg1: i32) -> (i32, i32) {
    %c0_i32 = arith.constant 0 : i32
    %c0_i32_0 = arith.constant 0 : i32
    %c0_i32_1 = arith.constant 0 : i32
    return %c0_i32, %c0_i32_0 : i32, i32
  }
  func.func @transform_4(%arg0: i32, %arg1: i32) -> (i32, i32) {
    %c0_i32 = arith.constant 0 : i32
    %c0_i32_0 = arith.constant 0 : i32
    return %c0_i32, %arg1 : i32, i32
  }
  func.func @transform_5(%arg0: i32, %arg1: i32) -> (i32, i32) {
    %c0_i32 = arith.constant 0 : i32
    %c0_i32_0 = arith.constant 0 : i32
    return %c0_i32, %arg1 : i32, i32
  }
  func.func @transform_6(%arg0: i32, %arg1: i32) -> (i32, i32) {
    %c0_i32 = arith.constant 0 : i32
    %c0_i32_0 = arith.constant 0 : i32
    return %c0_i32, %arg1 : i32, i32
  }
  func.func @transform_7(%arg0: i32, %arg1: i32) -> (i32, i32) {
    %c0_i32 = arith.constant 0 : i32
    return %arg0, %arg1 : i32, i32
  }
}

</mosaic_0001>

<bundles_post_ra>
// kernel: tpu_custom_call.1
= control target key start
LH: loop header
LB: loop body
LE: loop exit
PB: predicated region body
PF: predicated region fallthrough
CT: control target
= control target key end

     0   :  { %12 = vsyncpa [#allocation3], 0  ;;  %s719_s0 = inlined_call_operand.hbm [shape: f32[8,128], index: 0, kind: input, shape index: {}]   ;;  %s720_s1 = inlined_call_operand.vmem [shape: f32[128,128], index: 1, kind: input, shape index: {}]   ;;  %s721_s2 = inlined_call_operand.hbm [shape: f32[128,128], index: 2, kind: input, shape index: {}]   ;;  %s722_s3 = inlined_call_operand.vmem [shape: f32[128,1], index: 3, kind: input, shape index: {}]   ;;  %s723_s4 = inlined_call_operand.vmem [shape: f32[1,128], index: 4, kind: input, shape index: {}]   ;;  %s724_s5 = inlined_call_operand.vmem [shape: f32[1,128], index: 5, kind: input, shape index: {}]   ;;  %s725_s6 = inlined_call_operand.vmem [shape: f32[1,128], index: 6, kind: input, shape index: {}]   ;;  %s726_s7 = inlined_call_operand.hbm [shape: f32[8,128], index: 7, kind: output, shape index: {}]  }
   0x1   :  { %13 = vsyncpa [#allocation6], 0 }
   0x2   :  { %14 = vsyncpa [#allocation4], 0  ;;  %s493_s24 = smov [#allocation2]   ;;  %s494_s26 = smov [#allocation5]  }
   0x3   :  { %s21_s25 = sshll.u32 %s493_s24, 4  ;;  %s32_s27 = sshll.u32 %s494_s26, 4  ;;  %s22_s25 = int_to_ptr.vmem [resolvable:$true] %s21_s25  ;;  %s542_s27 = int_to_ptr.vmem [resolvable:$true] %s32_s27 }
   0x4   :  { %s421_s30 = scalar_lea.hbm %s719_s0, 128 }
   0x5   :  { %p422_p0 = scmp.ne.s32.totalorder %s719_s0, %s421_s30  ;;  %p425_p1 = scmp.lt.u32.totalorder %s421_s30, %s719_s0 }
   0x7   :  { %p427_p2 = pnand %p425_p1, %p422_p0 }
   0x9   :  { %430 = shalt.err (!%p427_p2)
}
   0xa   :  { %s431_s12 = scalar_lea.vmem %s22_s25, 128  ;;  %p436_p4 = scmp.lt.s32.totalorder %s22_s25, %s22_s25 }
   0xb   :  { %p432_p3 = scmp.ne.s32.totalorder %s22_s25, %s431_s12  ;;  %p437_p5 = scmp.lt.s32.totalorder %s431_s12, %s431_s12 }
   0xd   :  { %p438_p6 = por %p437_p5, %p436_p4 }
   0xf   :  { %p439_p7 = pnand %p438_p6, %p432_p3 }
  0x11   :  { %442 = shalt.err (!%p439_p7)
}
  0x12   :  { %24 = dma.hbm_to_vmem [thread:$0]  %s719_s0, 128, %s22_s25, [#allocation3]  }
  0x13   :  { %s443_s17 = scalar_lea.hbm %s721_s2, 2048 }
  0x14   :  { %p444_p8 = scmp.ne.s32.totalorder %s721_s2, %s443_s17  ;;  %p447_p9 = scmp.lt.u32.totalorder %s443_s17, %s721_s2 }
  0x16   :  { %p449_p10 = pnand %p447_p9, %p444_p8 }
  0x18   :  { %452 = shalt.err (!%p449_p10)
}
  0x19   :  { %s453_s22 = scalar_lea.vmem %s542_s27, 2048  ;;  %p458_p12 = scmp.lt.s32.totalorder %s542_s27, %s542_s27 }
  0x1a   :  { %p454_p11 = scmp.ne.s32.totalorder %s542_s27, %s453_s22  ;;  %p459_p13 = scmp.lt.s32.totalorder %s453_s22, %s453_s22 }
  0x1c   :  { %p460_p0 = por %p459_p13, %p458_p12 }
  0x1e   :  { %p461_p1 = pnand %p460_p0, %p454_p11 }
  0x20   :  { %464 = shalt.err (!%p461_p1)
}
  0x21   :  { %s495_s0 = smov 128   ;;  %s496_s23 = smov 8  }
  0x22   :  { %38 = dma.hbm_to_vmem [thread:$0]  %s721_s2, 2048, %s542_s27, [#allocation6], %s495_s0, %s495_s0, %s496_s23  }
  0x23   :  { %487 = dma.done.wait [#allocation3], 128  }
  0x24   :  { %488 = vsyncadd [#allocation3], 4294967168 }
  0x25   :  { %489 = dma.done.wait [#allocation6], 2048  }
  0x26   :  { %490 = vsyncadd [#allocation6], 4294965248  ;;  %v497_v0 = vmov 0   ;;  %v87_v1 = vld [vmem:[%s722_s3 + $0x10] sm:$0xff]  ;;  %v85_v2 = vld [vmem:[%s722_s3] sm:$0xff]  ;;  %v498_v9 = vmov 0.0|0.0   ;;  %v183_v18 = vlaneseq }
  0x27   :  { %420 = vset.pattern.permute.xlu1 %v497_v0  ;;  %419 = vset.pattern.permute.xlu0 %v497_v0  ;;  %v88_v3 = vld [vmem:[%s722_s3 + $0x18] sm:$0xff]  ;;  %v86_v4 = vld [vmem:[%s722_s3 + $0x8] sm:$0xff]  ;;  %v89_v6 = vld [vmem:[%s722_s3 + $0x20] sm:$0xff]  ;;  %vm499_vm0 = vmmov 0   ;;  %v500_v19 = vmov 0.0  }
  0x28   :  { %114 = vperm.xlu1 %420, %v87_v1   ;;  %104 = vperm.xlu0 %419, %v85_v2   ;;  %v90_v5 = vld [vmem:[%s722_s3 + $0x28] sm:$0xff]  ;;  %v92_v7 = vld [vmem:[%s722_s3 + $0x38] sm:$0xff]  ;;  %v91_v8 = vld [vmem:[%s722_s3 + $0x30] sm:$0xff]  ;;  %v184_v20 = vshrl.u32 %v183_v18, 7 }
  0x29   :  { %386 = vmatprep.subr.bf16.mxu0 %v498_v9  ;;  %v94_v10 = vld [vmem:[%s722_s3 + $0x48] sm:$0xff]  ;;  %v93_v11 = vld [vmem:[%s722_s3 + $0x40] sm:$0xff]  ;;  %v96_v12 = vld [vmem:[%s722_s3 + $0x58] sm:$0xff]  ;;  %383 = vmatprep.mubr.msk.f32.mxu0 %vm499_vm0, %v500_v19 }
  0x2a   :  { %v95_v13 = vld [vmem:[%s722_s3 + $0x50] sm:$0xff]  ;;  %v98_v14 = vld [vmem:[%s722_s3 + $0x68] sm:$0xff]  ;;  %v97_v15 = vld [vmem:[%s722_s3 + $0x60] sm:$0xff]  ;;  %v185_v25 = vsub.s32 0, %v184_v20 }
  0x2b   :  { %v100_v16 = vld [vmem:[%s722_s3 + $0x78] sm:$0xff]  ;;  %v99_v17 = vld [vmem:[%s722_s3 + $0x70] sm:$0xff]  ;;  %v101_v21 = vld [vmem:[%s723_s4] sm:$0x1] }
  0x2c   :  { %119 = vperm.xlu1 %420, %v88_v3   ;;  %109 = vperm.xlu0 %419, %v86_v4   ;;  %v236_v22 = vld [vmem:[%s724_s5] sm:$0x1]  ;;  %v633_v28 = vrot.slane %v101_v21, %v185_v25  ;;  %v69_v33 = vld [vmem:[#allocation5] sm:$0xff]  ;;  %v71_v34 = vld [vmem:[#allocation5 + $0x10] sm:$0xff] }
  0x2d   :  { %v237_v23 = vld [vmem:[%s725_s6] sm:$0x1]  ;;  %v70_v38 = vld [vmem:[#allocation5 + $0x8] sm:$0xff]  ;;  %v54_v44 = vld [vmem:[%s720_s1 + $0x8] sm:$0xff]  ;;  %s501_s6 = smov [#allocation7]  }
  0x2e   :  { %v238_v24 = vmul.f32 %v237_v23, %v101_v21  ;;  %v72_v36 = vld [vmem:[#allocation5 + $0x18] sm:$0xff]  ;;  %v55_v45 = vld [vmem:[%s720_s1 + $0x10] sm:$0xff]  ;;  %v56_v46 = vld [vmem:[%s720_s1 + $0x18] sm:$0xff]  ;;  %s324_s15 = sshll.u32 %s501_s6, 4  ;;  %s325_s15 = int_to_ptr.vmem [resolvable:$true] %s324_s15 }
  0x2f   :  { %v53_v43 = vld [vmem:[%s720_s1] sm:$0xff]  ;;  %v74_v50 = vld [vmem:[#allocation5 + $0x28] sm:$0xff]  ;;  %v73_v52 = vld [vmem:[#allocation5 + $0x20] sm:$0xff]  ;;  %p470_p3 = scmp.lt.s32.totalorder %s325_s15, %s325_s15 }
  0x30   :  { %129 = vperm.xlu1 %420, %v90_v5   ;;  %124 = vperm.xlu0 %419, %v89_v6   ;;  %v239_v26 = vadd.f32 %v238_v24, %v236_v22  ;;  %v58_v59 = vld [vmem:[%s720_s1 + $0x28] sm:$0xff]  ;;  %v57_v63 = vld [vmem:[%s720_s1 + $0x20] sm:$0xff]  ;;  %v75_v3 = vld [vmem:[#allocation5 + $0x30] sm:$0xff] }
  0x31   :  { %v76_v1 = vld [vmem:[#allocation5 + $0x38] sm:$0xff]  ;;  %v62_v22 = vld [vmem:[%s720_s1 + $0x48] sm:$0xff] }
  0x32   :  { %v631_v27 = vrot.slane %v239_v26, %v185_v25  ;;  %v61_v26 = vld [vmem:[%s720_s1 + $0x40] sm:$0xff] }
  0x34   :  { %139 = vperm.xlu1 %420, %v92_v7   ;;  %134 = vperm.xlu0 %419, %v91_v8  }
  0x38   :  { %149 = vperm.xlu1 %420, %v94_v10   ;;  %144 = vperm.xlu0 %419, %v93_v11   ;;  %v60_v10 = vld [vmem:[%s720_s1 + $0x38] sm:$0xff] }
  0x3c   :  { %159 = vperm.xlu1 %420, %v96_v12   ;;  %154 = vperm.xlu0 %419, %v95_v13   ;;  %v59_v12 = vld [vmem:[%s720_s1 + $0x30] sm:$0xff] }
  0x40   :  { %169 = vperm.xlu1 %420, %v98_v14   ;;  %164 = vperm.xlu0 %419, %v97_v15   ;;  %v78_v15 = vld [vmem:[#allocation5 + $0x48] sm:$0xff] }
  0x44   :  { %179 = vperm.xlu1 %420, %v100_v16   ;;  %174 = vperm.xlu0 %419, %v99_v17   ;;  %v77_v17 = vld [vmem:[#allocation5 + $0x40] sm:$0xff] }
  0xa7   :  { %v115_v29 = vpop.permute.xlu1 %114  ;;  %v105_v30 = vpop.permute.xlu0 %104 }
  0xa8   :  { %v188_v31 = vmul.f32 %v633_v28, %v105_v30  ;;  %v190_v32 = vmul.f32 %v633_v28, %v115_v29  ;;  %v80_v30 = vld [vmem:[#allocation5 + $0x58] sm:$0xff] }
  0xaa   :  { %v204_v39 = vmul.f32 %v188_v31, %v69_v33  ;;  %v206_v42 = vmul.f32 %v190_v32, %v71_v34  ;;  %v79_v32 = vld [vmem:[#allocation5 + $0x50] sm:$0xff] }
  0xab   :  { %v120_v35 = vpop.permute.xlu1 %119  ;;  %v110_v37 = vpop.permute.xlu0 %109 }
  0xac   :  { %v191_v40 = vmul.f32 %v633_v28, %v120_v35  ;;  %v189_v41 = vmul.f32 %v633_v28, %v110_v37  ;;  %v220_v55 = vadd.f32 %v204_v39, %v53_v43  ;;  %v222_v57 = vadd.f32 %v206_v42, %v55_v45  ;;  %v82_v43 = vld [vmem:[#allocation5 + $0x68] sm:$0xff]  ;;  %v81_v45 = vld [vmem:[#allocation5 + $0x60] sm:$0xff] }
  0xae   :  { %v207_v47 = vmul.f32 %v191_v40, %v72_v36  ;;  %v205_v48 = vmul.f32 %v189_v41, %v70_v38  ;;  %v64_v38 = vld [vmem:[%s720_s1 + $0x58] sm:$0xff]  ;;  %v63_v40 = vld [vmem:[%s720_s1 + $0x50] sm:$0xff] }
  0xaf   :  { %v130_v49 = vpop.permute.xlu1 %129  ;;  %v125_v51 = vpop.permute.xlu0 %124 }
  0xb0   :  { %v193_v53 = vmul.f32 %v633_v28, %v130_v49  ;;  %v192_v54 = vmul.f32 %v633_v28, %v125_v51  ;;  %v221_v56 = vadd.f32 %v205_v48, %v54_v44  ;;  %v223_v58 = vadd.f32 %v207_v47, %v56_v46 }
  0xb2   :  { %v209_v60 = vmul.f32 %v193_v53, %v74_v50  ;;  %v208_v61 = vmul.f32 %v192_v54, %v73_v52  ;;  %v387_v62 = vpack.c.bf16 %v221_v56, %v220_v55  ;;  %v390_v6 = vpack.c.bf16 %v223_v58, %v222_v57  ;;  %v66_v50 = vld [vmem:[%s720_s1 + $0x68] sm:$0xff]  ;;  %v65_v54 = vld [vmem:[%s720_s1 + $0x60] sm:$0xff]  ;;  %v83_v58 = vld [vmem:[#allocation5 + $0x70] sm:$0xff] }
  0xb3   :  { %v140_v0 = vpop.permute.xlu1 %139  ;;  %v135_v2 = vpop.permute.xlu0 %134  ;;  %v84_v56 = vld [vmem:[#allocation5 + $0x78] sm:$0xff] }
  0xb4   :  { %v195_v4 = vmul.f32 %v633_v28, %v140_v0  ;;  %v194_v5 = vmul.f32 %v633_v28, %v135_v2  ;;  %388 = vmatpush3.bf16.msra.mxu0 %v387_v62  ;;  %v225_v7 = vadd.f32 %v209_v60, %v58_v59  ;;  %v224_v8 = vadd.f32 %v208_v61, %v57_v63  ;;  %v68_v2 = vld [vmem:[%s720_s1 + $0x78] sm:$0xff] }
  0xb5   :  { %389 = vmatprep.subr.bf16.mxu0 %v498_v9 }
  0xb6   :  { %v211_v11 = vmul.f32 %v195_v4, %v76_v1  ;;  %v210_v13 = vmul.f32 %v194_v5, %v75_v3  ;;  %v393_v25 = vpack.c.bf16 %v225_v7, %v224_v8  ;;  %v67_v3 = vld [vmem:[%s720_s1 + $0x70] sm:$0xff]  ;;  %v240_v7 = vld [vmem:[#allocation2] sm:$0xff]  ;;  %s465_s1 = scalar_lea.vmem %s325_s15, 128 }
  0xb7   :  { %v150_v14 = vpop.permute.xlu1 %149  ;;  %v145_v16 = vpop.permute.xlu0 %144  ;;  %p466_p2 = scmp.ne.s32.totalorder %s325_s15, %s465_s1  ;;  %p471_p4 = scmp.lt.s32.totalorder %s465_s1, %s465_s1 }
  0xb8   :  { %v197_v18 = vmul.f32 %v633_v28, %v150_v14  ;;  %v196_v19 = vmul.f32 %v633_v28, %v145_v16  ;;  %391 = vmatpush3.bf16.msra.mxu0 %v390_v6  ;;  %v227_v20 = vadd.f32 %v211_v11, %v60_v10  ;;  %v226_v21 = vadd.f32 %v210_v13, %v59_v12 }
  0xb9   :  { %392 = vmatprep.subr.bf16.mxu0 %v498_v9  ;;  %p472_p5 = por %p471_p4, %p470_p3 }
  0xba   :  { %v213_v23 = vmul.f32 %v197_v18, %v78_v15  ;;  %v212_v24 = vmul.f32 %v196_v19, %v77_v17  ;;  %v396_v35 = vpack.c.bf16 %v227_v20, %v226_v21 }
  0xbb   :  { %v160_v29 = vpop.permute.xlu1 %159  ;;  %v155_v31 = vpop.permute.xlu0 %154  ;;  %p473_p6 = pnand %p472_p5, %p466_p2 }
  0xbc   :  { %v199_v33 = vmul.f32 %v633_v28, %v160_v29  ;;  %v198_v34 = vmul.f32 %v633_v28, %v155_v31  ;;  %394 = vmatpush3.bf16.msra.mxu0 %v393_v25  ;;  %v229_v36 = vadd.f32 %v213_v23, %v62_v22  ;;  %v228_v37 = vadd.f32 %v212_v24, %v61_v26 }
  0xbd   :  { %395 = vmatprep.subr.bf16.mxu0 %v498_v9 }
  0xbe   :  { %v215_v39 = vmul.f32 %v199_v33, %v80_v30  ;;  %v214_v41 = vmul.f32 %v198_v34, %v79_v32  ;;  %v399_v53 = vpack.c.bf16 %v229_v36, %v228_v37 }
  0xbf   :  { %v170_v42 = vpop.permute.xlu1 %169  ;;  %v165_v44 = vpop.permute.xlu0 %164 }
  0xc0   :  { %v201_v46 = vmul.f32 %v633_v28, %v170_v42  ;;  %v200_v47 = vmul.f32 %v633_v28, %v165_v44  ;;  %397 = vmatpush3.bf16.msra.mxu0 %v396_v35  ;;  %v231_v48 = vadd.f32 %v215_v39, %v64_v38  ;;  %v230_v49 = vadd.f32 %v214_v41, %v63_v40 }
  0xc1   :  { %398 = vmatprep.subr.bf16.mxu0 %v498_v9 }
  0xc2   :  { %v217_v51 = vmul.f32 %v201_v46, %v82_v43  ;;  %v216_v52 = vmul.f32 %v200_v47, %v81_v45  ;;  %v402_v61 = vpack.c.bf16 %v231_v48, %v230_v49 }
  0xc3   :  { %v180_v55 = vpop.permute.xlu1 %179  ;;  %v175_v57 = vpop.permute.xlu0 %174 }
  0xc4   :  { %v203_v59 = vmul.f32 %v633_v28, %v180_v55  ;;  %v202_v60 = vmul.f32 %v633_v28, %v175_v57  ;;  %400 = vmatpush3.bf16.msra.mxu0 %v399_v53  ;;  %v233_v62 = vadd.f32 %v217_v51, %v66_v50  ;;  %v232_v63 = vadd.f32 %v216_v52, %v65_v54 }
  0xc5   :  { %401 = vmatprep.subr.bf16.mxu0 %v498_v9 }
  0xc6   :  { %v219_v0 = vmul.f32 %v203_v59, %v84_v56  ;;  %v218_v1 = vmul.f32 %v202_v60, %v83_v58  ;;  %v405_v5 = vpack.c.bf16 %v233_v62, %v232_v63 }
  0xc8   :  { %403 = vmatpush3.bf16.msra.mxu0 %v402_v61  ;;  %v235_v28 = vadd.f32 %v219_v0, %v68_v2  ;;  %v234_v4 = vadd.f32 %v218_v1, %v67_v3 }
  0xc9   :  { %404 = vmatprep.subr.bf16.mxu0 %v498_v9 }
  0xca   :  { %v408_v6 = vpack.c.bf16 %v235_v28, %v234_v4 }
  0xcc   :  { %406 = vmatpush3.bf16.msra.mxu0 %v405_v5 }
  0xcd   :  { %407 = vmatprep.subr.bf16.mxu0 %v498_v9 }
  0xd0   :  { %409 = vmatpush3.bf16.msra.mxu0 %v408_v6 }
  0xd3   :  { %384 = vmatmul.mubr.f32.vlgmr.msra.gmra.mrb[0].mxu0 %v240_v7 }
 0x1a6   :  { %v313_v8 = vpop.f32.mrb[0].mxu0 }
 0x1a7   :  { %v314_v10 = vadd.f32 %v313_v8, %v631_v27  ;;  %v385_v11 = vpop.f32.mrb[1].mxu0 }
 0x1a9   :  { %317 = vst [vmem:[#allocation7] sm:$0xff] %v314_v10 }
 0x1aa   :  { %476 = shalt.err (!%p473_p6)
}
 0x1ab   :  { %s477_s18 = scalar_lea.hbm %s726_s7, 128 }
 0x1ac   :  { %p478_p7 = scmp.ne.s32.totalorder %s726_s7, %s477_s18  ;;  %p481_p8 = scmp.lt.u32.totalorder %s477_s18, %s726_s7 }
 0x1ae   :  { %p483_p9 = pnand %p481_p8, %p478_p7 }
 0x1b0   :  { %486 = shalt.err (!%p483_p9)
}
 0x1b1   :  { %327 = dma.vmem_to_hbm [thread:$0]  %s325_s15, 128, %s726_s7, [#allocation4]  }
 0x1b2   :  { %491 = dma.done.wait [#allocation4], 128  }
 0x1b3   :  { %492 = vsyncadd [#allocation4], 4294967168 }
 0x1b4   :  { %331 = vsyncpa [#allocation3], 1 }
 0x1b5   :  { %332 = vsyncpa [#allocation6], 1 }
 0x1b6   :  { %333 = vsyncpa [#allocation4], 1 }

</bundles_post_ra>
